<compile_context>
chip_gen: v7x
topology: tpu7x:2x2x1
jax: 0.10.0
libtpu: 0.0.40
codegen_flags: <defaults>
</compile_context>

<pallas_src>
import jax
import jax.numpy as jnp
from jax.experimental import pallas as pl
from jax.experimental.pallas import tpu as pltpu

EPS = 1e-6


def _round_up(a, m):
    return (a + m - 1) // m * m


def _vmem_limit_bytes():
    """Generation-aware VMEM budget (bytes)."""
    try:
        kind = jax.devices()[0].device_kind.lower()
    except Exception:
        kind = ""
    if "v7" in kind or "7x" in kind:
        return 48 * 1024 * 1024   # headroom under v7x's 64 MiB physical per-TC VMEM
    return 64 * 1024 * 1024       # v5e / v6e: 128 MiB physical


def _make_kernel(d_real, d_pad, tk, k_steps):
    """Kernel factory closed over static shape facts."""
    inv_n = 1.0 / d_real
    inv_nm1 = 1.0 / max(d_real - 1, 1)      # guard d_model == 1
    needs_mask = d_pad != d_real

    def epilogue(sub_f32, x_tile, gain, beta, o_ref):
        # Residual + torch-style LayerNormalization (unbiased std, eps added to std).
        y = sub_f32 + x_tile.astype(jnp.float32)
        # Padded lanes of y are exactly zero (zero-padded x, W cols, b), so the mean
        # needs no mask; only `diff` must be masked before the variance.
        mean = jnp.sum(y, axis=-1, keepdims=True) * inv_n
        diff = y - mean
        if needs_mask:
            lane = jax.lax.broadcasted_iota(jnp.int32, diff.shape, 1)
            diff = jnp.where(lane < d_real, diff, 0.0)
        var = jnp.sum(diff * diff, axis=-1, keepdims=True) * inv_nm1
        inv_std = pl.reciprocal(jnp.sqrt(var) + EPS, approx=True)   # EUP, off the VALU
        o_ref[...] = (gain * (diff * inv_std) + beta).astype(o_ref.dtype)

    if k_steps == 1:
        # Resident-W path: full (Dp, Dp) bf16 weight stays in VMEM (single-buffered).
        def kernel(x_ref, w_ref, b_ref, gain_ref, beta_ref, o_ref):
            x = x_ref[...]                                  # native dtype (f32 or bf16)
            sub = jnp.dot(x.astype(jnp.bfloat16), w_ref[...],
                          preferred_element_type=jnp.float32)
            sub = sub + b_ref[...]
            epilogue(sub, x, gain_ref[...], beta_ref[...], o_ref)

        return kernel

    # Streaming-W path: K grid axis, (tk, Dp) W blocks, f32 VMEM accumulator.
    def kernel(x_ref, w_ref, b_ref, gain_ref, beta_ref, o_ref, acc_ref):
        k = pl.program_id(1)

        @pl.when(k == 0)
        def _():
            acc_ref[...] = jnp.zeros_like(acc_ref)

        off = pl.multiple_of(k * tk, 128)
        x_chunk = x_ref[:, pl.ds(off, tk)]
        acc_ref[...] += jnp.dot(x_chunk.astype(jnp.bfloat16), w_ref[...],
                                preferred_element_type=jnp.float32)

        @pl.when(k == k_steps - 1)
        def _():
            sub = acc_ref[...] + b_ref[...]
            epilogue(sub, x_ref[...], gain_ref[...], beta_ref[...], o_ref)

    return kernel


def prepare_params(w, b, gain, beta):
    """Pad (only if d_model % 128 != 0) and cast parameters ONCE, outside the hot path."""
    D = w.shape[0]
    Dp = _round_up(D, 128)
    w_f32 = w.astype(jnp.float32)
    if Dp != D:
        w_f32 = jnp.pad(w_f32, ((0, Dp - D), (0, Dp - D)))
    w_bf16 = w_f32.astype(jnp.bfloat16)

    def pad_vec(v):
        v = v.reshape(1, D).astype(jnp.float32)
        if Dp != D:
            v = jnp.pad(v, ((0, 0), (0, Dp - D)))
        return v

    return {"w": w_bf16, "b": pad_vec(b), "gain": pad_vec(gain),
            "beta": pad_vec(beta), "d": D, "dp": Dp}


def sublayer_forward(x, params, *, tm=256, tk=None):
    """x: (B, S, D) f32 or bf16.  params: from prepare_params.  Returns (B, S, D) in x.dtype."""
    B, S, D = x.shape
    assert D == params["d"], "d_model mismatch"
    Dp = params["dp"]
    M = B * S

    x2 = x.reshape(M, D)                          # metadata-only reshape; native dtype
    if Dp != D:
        x2 = jnp.pad(x2, ((0, 0), (0, Dp - D)))   # zero feature pad only when needed

    # Row tiling: no row padding; ragged last block handled by Pallas partial-block
    # masking (math is per-row, garbage rows never contaminate valid rows).
    tm = max(8, (tm // 8) * 8)
    tm_eff = M if M <= tm else tm                 # block == full dim is always legal
    grid_m = pl.cdiv(M, tm_eff)
    # For M > tm the grid has >= 2 steps, so the "parallel" axis can shard across both
    # TensorCores on v7x.

    vmem_limit = _vmem_limit_bytes()

    # Resident vs. streaming weight decision.
    w_bytes = 2 * Dp * Dp                         # bf16
    if tk is None:
        if w_bytes <= vmem_limit // 2:
            tk = Dp
        else:
            budget = vmem_limit // 4              # per streamed W block (double-buffered)
            n128 = Dp // 128
            tk = 128
            for d in range(n128, 0, -1):
                cand = 128 * d
                if n128 % d == 0 and cand * Dp * 2 <= budget:
                    tk = cand
                    break
    assert tk % 128 == 0 and Dp % tk == 0, "tk must be a 128-multiple divisor of padded D"
    k_steps = Dp // tk

    kernel = _make_kernel(D, Dp, tk, k_steps)
    resident = pl.Buffered(1)                     # grid-invariant operands: single buffer

    if k_steps == 1:
        grid = (grid_m,)
        in_specs = [
            pl.BlockSpec((tm_eff, Dp), lambda i: (i, 0)),
            pl.BlockSpec((Dp, Dp), lambda i: (0, 0), pipeline_mode=resident),
            pl.BlockSpec((1, Dp), lambda i: (0, 0), pipeline_mode=resident),
            pl.BlockSpec((1, Dp), lambda i: (0, 0), pipeline_mode=resident),
            pl.BlockSpec((1, Dp), lambda i: (0, 0), pipeline_mode=resident),
        ]
        out_specs = pl.BlockSpec((tm_eff, Dp), lambda i: (i, 0))
        scratch_shapes = []
        dim_sem = ("parallel",)
    else:
        grid = (grid_m, k_steps)
        in_specs = [
            pl.BlockSpec((tm_eff, Dp), lambda i, k: (i, 0)),   # fetched once per row tile
            pl.BlockSpec((tk, Dp), lambda i, k: (k, 0)),       # streamed, double-buffered
            pl.BlockSpec((1, Dp), lambda i, k: (0, 0), pipeline_mode=resident),
            pl.BlockSpec((1, Dp), lambda i, k: (0, 0), pipeline_mode=resident),
            pl.BlockSpec((1, Dp), lambda i, k: (0, 0), pipeline_mode=resident),
        ]
        out_specs = pl.BlockSpec((tm_eff, Dp), lambda i, k: (i, 0))
        scratch_shapes = [pltpu.VMEM((tm_eff, Dp), jnp.float32)]
        dim_sem = ("parallel", "arbitrary")

    out2 = pl.pallas_call(
        kernel,
        out_shape=jax.ShapeDtypeStruct((M, Dp), x.dtype),
        grid_spec=pltpu.PrefetchScalarGridSpec(
            num_scalar_prefetch=0,
            grid=grid,
            in_specs=in_specs,
            out_specs=out_specs,
            scratch_shapes=scratch_shapes,
        ),
        compiler_params=pltpu.CompilerParams(
            dimension_semantics=dim_sem,
            vmem_limit_bytes=vmem_limit,
        ),
    )(x2, params["w"], params["b"], params["gain"], params["beta"])

    if Dp != D:
        out2 = out2[:, :D]
    return out2.reshape(B, S, D)


def reference(x, w, b, gain, beta):
    # Same bf16 matmul / f32 accumulation semantics as the kernel; residual/LN in f32.
    sub = jnp.einsum(
        "bsd,de->bse",
        x.astype(jnp.bfloat16), w.astype(jnp.bfloat16),
        preferred_element_type=jnp.float32,
    ) + b.astype(jnp.float32)
    y = sub + x.astype(jnp.float32)
    d = y.shape[-1]
    mean = jnp.mean(y, axis=-1, keepdims=True)
    diff = y - mean
    var = jnp.sum(diff * diff, axis=-1, keepdims=True) / max(d - 1, 1)
    std = jnp.sqrt(var)
    return gain.astype(jnp.float32) * diff / (std + EPS) + beta.astype(jnp.float32)


def _make_case(key, B, S, D, dtype):
    kx, kw, kb = jax.random.split(key, 3)
    x = jax.random.normal(kx, (B, S, D), dtype=jnp.float32).astype(dtype)
    w = jax.random.normal(kw, (D, D), dtype=jnp.float32) * (1.0 / jnp.sqrt(D))
    b = jax.random.normal(kb, (D,), dtype=jnp.float32) * 0.02
    gain = jnp.ones((D,), dtype=jnp.float32)      # LayerNormalization.gain init
    beta = jnp.zeros((D,), dtype=jnp.float32)     # LayerNormalization.bias init
    return x, w, b, gain, beta


if __name__ == "__main__":
    keys = jax.random.split(jax.random.PRNGKey(0), 5)

    # 1) main case: lane-dense d_model, resident-W path, f32 activations.
    x, w, b, g, be = _make_case(keys[0], 2, 8, 128, jnp.float32)
    p = prepare_params(w, b, g, be)
    out = jax.block_until_ready(sublayer_forward(x, p))
    ref = reference(x, w, b, g, be)
    assert out.shape == x.shape
    assert jnp.allclose(out, ref, atol=5e-3, rtol=5e-3), "mismatch (D=128, f32)"

    # 2) D not a multiple of 128: feature-pad + diff-mask path.
    x, w, b, g, be = _make_case(keys[1], 1, 4, 96, jnp.float32)
    p = prepare_params(w, b, g, be)
    out = jax.block_until_ready(sublayer_forward(x, p))
    ref = reference(x, w, b, g, be)
    assert jnp.allclose(out, ref, atol=5e-3, rtol=5e-3), "mismatch (D=96)"

    # 3) bf16 activations: bf16 HBM reads/writes, f32 residual/LN in-kernel.
    x, w, b, g, be = _make_case(keys[2], 2, 8, 128, jnp.bfloat16)
    p = prepare_params(w, b, g, be)
    out = jax.block_until_ready(sublayer_forward(x, p))
    assert out.dtype == jnp.bfloat16
    ref = reference(x, w, b, g, be)
    assert jnp.allclose(out.astype(jnp.float32), ref, atol=3e-2, rtol=3e-2), "mismatch (bf16)"

    # 4) forced K-split (streaming W + f32 accumulator epilogue) exercised at small D.
    x, w, b, g, be = _make_case(keys[3], 2, 8, 256, jnp.float32)
    p = prepare_params(w, b, g, be)
    out = jax.block_until_ready(sublayer_forward(x, p, tk=128))
    ref = reference(x, w, b, g, be)
    assert jnp.allclose(out, ref, atol=5e-3, rtol=5e-3), "mismatch (K-split)"

    # 5) ragged row count (M=10, tm=8): partial last row block, no wrapper row padding.
    x, w, b, g, be = _make_case(keys[4], 1, 10, 128, jnp.float32)
    p = prepare_params(w, b, g, be)
    out = jax.block_until_ready(sublayer_forward(x, p, tm=8))
    ref = reference(x, w, b, g, be)
    assert jnp.allclose(out, ref, atol=5e-3, rtol=5e-3), "mismatch (ragged rows)"

    print("KERNEL_OK")
</pallas_src>

<mosaic_0001>
module attributes {stable_mosaic.version = 11 : i64} {
  func.func @kernel(%arg0: i32, %arg1: memref<16x128xf32, #tpu.memory_space<vmem>>, %arg2: memref<128x128xbf16, #tpu.memory_space<vmem>>, %arg3: memref<1x128xf32, #tpu.memory_space<vmem>>, %arg4: memref<1x128xf32, #tpu.memory_space<vmem>>, %arg5: memref<1x128xf32, #tpu.memory_space<vmem>>, %arg6: memref<16x128xf32, #tpu.memory_space<vmem>>) attributes {dimension_semantics = [#tpu.dimension_semantics<parallel>], iteration_bounds = array<i64: 1>, scalar_prefetch = 0 : i64, scratch_operands = 0 : i64, tpu.core_type = #tpu.core_type<tc>, window_params = [{transform_indices = @transform_0, window_bounds = array<i64: 16, 128>}, {pipeline_mode = #tpu.pipeline_mode<synchronous>, transform_indices = @transform_1, window_bounds = array<i64: 128, 128>}, {pipeline_mode = #tpu.pipeline_mode<synchronous>, transform_indices = @transform_2, window_bounds = array<i64: 1, 128>}, {pipeline_mode = #tpu.pipeline_mode<synchronous>, transform_indices = @transform_3, window_bounds = array<i64: 1, 128>}, {pipeline_mode = #tpu.pipeline_mode<synchronous>, transform_indices = @transform_4, window_bounds = array<i64: 1, 128>}, {transform_indices = @transform_5, window_bounds = array<i64: 16, 128>}]} {
    %c0 = arith.constant 0 : index
    %c0_0 = arith.constant 0 : index
    %0 = vector.load %arg1[%c0, %c0_0] : memref<16x128xf32, #tpu.memory_space<vmem>>, vector<16x128xf32>
    %1 = arith.truncf %0 : vector<16x128xf32> to vector<16x128xbf16>
    %c0_1 = arith.constant 0 : index
    %c0_2 = arith.constant 0 : index
    %2 = vector.load %arg2[%c0_1, %c0_2] : memref<128x128xbf16, #tpu.memory_space<vmem>>, vector<128x128xbf16>
    %cst = arith.constant dense<0.000000e+00> : vector<16x128xf32>
    %3 = tpu.matmul %1, %2, %cst {dimension_numbers = #tpu.dot_dimension_numbers<[1], [0], [0], [1], [0, 0, 1, 1], [], []>} : vector<16x128xbf16>, vector<128x128xbf16>, vector<16x128xf32> -> vector<16x128xf32>
    %c0_3 = arith.constant 0 : index
    %c0_4 = arith.constant 0 : index
    %4 = vector.load %arg3[%c0_3, %c0_4] : memref<1x128xf32, #tpu.memory_space<vmem>>, vector<1x128xf32>
    %5 = vector.broadcast %4 : vector<1x128xf32> to vector<16x128xf32>
    %6 = arith.addf %3, %5 : vector<16x128xf32>
    %c0_5 = arith.constant 0 : index
    %c0_6 = arith.constant 0 : index
    %7 = vector.load %arg4[%c0_5, %c0_6] : memref<1x128xf32, #tpu.memory_space<vmem>>, vector<1x128xf32>
    %c0_7 = arith.constant 0 : index
    %c0_8 = arith.constant 0 : index
    %8 = vector.load %arg5[%c0_7, %c0_8] : memref<1x128xf32, #tpu.memory_space<vmem>>, vector<1x128xf32>
    %9 = arith.addf %6, %0 : vector<16x128xf32>
    %cst_9 = arith.constant dense<0.000000e+00> : vector<16xf32>
    %10 = vector.multi_reduction <add>, %9, %cst_9 [1] : vector<16x128xf32> to vector<16xf32>
    %11 = vector.shape_cast %10 : vector<16xf32> to vector<16x1xf32>
    %cst_10 = arith.constant 7.812500e-03 : f32
    %12 = vector.broadcast %cst_10 : f32 to vector<16x1xf32>
    %13 = arith.mulf %11, %12 : vector<16x1xf32>
    %14 = vector.broadcast %13 : vector<16x1xf32> to vector<16x128xf32>
    %15 = arith.subf %9, %14 : vector<16x128xf32>
    %16 = arith.mulf %15, %15 : vector<16x128xf32>
    %cst_11 = arith.constant dense<0.000000e+00> : vector<16xf32>
    %17 = vector.multi_reduction <add>, %16, %cst_11 [1] : vector<16x128xf32> to vector<16xf32>
    %18 = vector.shape_cast %17 : vector<16xf32> to vector<16x1xf32>
    %cst_12 = arith.constant 0.00787401571 : f32
    %19 = vector.broadcast %cst_12 : f32 to vector<16x1xf32>
    %20 = arith.mulf %18, %19 : vector<16x1xf32>
    %21 = math.sqrt %20 : vector<16x1xf32>
    %cst_13 = arith.constant 9.99999997E-7 : f32
    %22 = vector.broadcast %cst_13 : f32 to vector<16x1xf32>
    %23 = arith.addf %21, %22 : vector<16x1xf32>
    %24 = tpu.reciprocal %23 {approx = true} : vector<16x1xf32> -> vector<16x1xf32>
    %25 = vector.broadcast %24 : vector<16x1xf32> to vector<16x128xf32>
    %26 = arith.mulf %15, %25 : vector<16x128xf32>
    %27 = vector.broadcast %7 : vector<1x128xf32> to vector<16x128xf32>
    %28 = arith.mulf %27, %26 : vector<16x128xf32>
    %29 = vector.broadcast %8 : vector<1x128xf32> to vector<16x128xf32>
    %30 = arith.addf %28, %29 : vector<16x128xf32>
    %c0_14 = arith.constant 0 : index
    %c0_15 = arith.constant 0 : index
    %31 = vector.load %arg6[%c0_14, %c0_15] : memref<16x128xf32, #tpu.memory_space<vmem>>, vector<16x128xf32>
    tpu.vector_store %arg6[%c0_14, %c0_15], %30 {strides = array<i32>} : memref<16x128xf32, #tpu.memory_space<vmem>>, vector<16x128xf32>,
    return
  }
  func.func @transform_0(%arg0: i32) -> (i32, i32) {
    %c0_i32 = arith.constant 0 : i32
    %c0_i32_0 = arith.constant 0 : i32
    return %arg0, %c0_i32 : i32, i32
  }
  func.func @transform_1(%arg0: i32) -> (i32, i32) {
    %c0_i32 = arith.constant 0 : i32
    %c0_i32_0 = arith.constant 0 : i32
    %c0_i32_1 = arith.constant 0 : i32
    return %c0_i32, %c0_i32_0 : i32, i32
  }
  func.func @transform_2(%arg0: i32) -> (i32, i32) {
    %c0_i32 = arith.constant 0 : i32
    %c0_i32_0 = arith.constant 0 : i32
    %c0_i32_1 = arith.constant 0 : i32
    return %c0_i32, %c0_i32_0 : i32, i32
  }
  func.func @transform_3(%arg0: i32) -> (i32, i32) {
    %c0_i32 = arith.constant 0 : i32
    %c0_i32_0 = arith.constant 0 : i32
    %c0_i32_1 = arith.constant 0 : i32
    return %c0_i32, %c0_i32_0 : i32, i32
  }
  func.func @transform_4(%arg0: i32) -> (i32, i32) {
    %c0_i32 = arith.constant 0 : i32
    %c0_i32_0 = arith.constant 0 : i32
    %c0_i32_1 = arith.constant 0 : i32
    return %c0_i32, %c0_i32_0 : i32, i32
  }
  func.func @transform_5(%arg0: i32) -> (i32, i32) {
    %c0_i32 = arith.constant 0 : i32
    %c0_i32_0 = arith.constant 0 : i32
    return %arg0, %c0_i32 : i32, i32
  }
}

</mosaic_0001>

<bundles_post_ra>
// kernel: tpu_custom_call.1
= control target key start
LH: loop header
LB: loop body
LE: loop exit
PB: predicated region body
PF: predicated region fallthrough
CT: control target
= control target key end

     0   :  { %10 = vsyncpa [#allocation3], 0  ;;  %s604_s0 = inlined_call_operand.hbm [shape: f32[16,128], index: 0, kind: input, shape index: {}]   ;;  %s605_s1 = inlined_call_operand.hbm [shape: bf16[128,128], index: 1, kind: input, shape index: {}]   ;;  %s606_s2 = inlined_call_operand.hbm [shape: f32[1,128], index: 2, kind: input, shape index: {}]   ;;  %s607_s3 = inlined_call_operand.hbm [shape: f32[1,128], index: 3, kind: input, shape index: {}]   ;;  %s608_s4 = inlined_call_operand.hbm [shape: f32[1,128], index: 4, kind: input, shape index: {}]   ;;  %s609_s5 = inlined_call_operand.hbm [shape: f32[16,128], index: 5, kind: output, shape index: {}]  }
   0x1   :  { %11 = vsyncpa [#allocation6], 0 }
   0x2   :  { %12 = vsyncpa [#allocation9], 0 }
   0x3   :  { %13 = vsyncpa [#allocation4], 0  ;;  %s484_s18 = smov [#allocation5]   ;;  %s344_s22 = scalar_lea.hbm %s605_s1, 1024 }
   0x4   :  { %s31_s19 = sshll.u32 %s484_s18, 4  ;;  %p345_p0 = scmp.ne.s32.totalorder %s605_s1, %s344_s22  ;;  %s32_s19 = int_to_ptr.vmem [resolvable:$true] %s31_s19 }
   0x5   :  { %p348_p1 = scmp.lt.u32.totalorder %s344_s22, %s605_s1 }
   0x7   :  { %p350_p2 = pnand %p348_p1, %p345_p0 }
   0x9   :  { %353 = shalt.err (!%p350_p2)
}
   0xa   :  { %s354_s27 = scalar_lea.vmem %s32_s19, 1024  ;;  %p359_p4 = scmp.lt.s32.totalorder %s32_s19, %s32_s19 }
   0xb   :  { %p355_p3 = scmp.ne.s32.totalorder %s32_s19, %s354_s27  ;;  %p360_p5 = scmp.lt.s32.totalorder %s354_s27, %s354_s27 }
   0xd   :  { %p361_p6 = por %p360_p5, %p359_p4 }
   0xf   :  { %p362_p7 = pnand %p361_p6, %p355_p3 }
  0x11   :  { %365 = shalt.err (!%p362_p7)
}
  0x12   :  { %s485_s28 = smov 64   ;;  %s486_s29 = smov 4  }
  0x13   :  { %37 = dma.hbm_to_vmem [thread:$0]  %s605_s1, 1024, %s32_s19, [#allocation6], %s485_s28, %s485_s28, %s486_s29  }
  0x14   :  { %s487_s7 = smov [#allocation8]   ;;  %s488_s9 = smov [#allocation2]  }
  0x15   :  { %s54_s8 = sshll.u32 %s487_s7, 4  ;;  %s19_s10 = sshll.u32 %s488_s9, 4  ;;  %s55_s8 = int_to_ptr.vmem [resolvable:$true] %s54_s8  ;;  %s20_s10 = int_to_ptr.vmem [resolvable:$true] %s19_s10 }
  0x16   :  { %s366_s13 = scalar_lea.hbm %s607_s3, 16 }
  0x17   :  { %p367_p8 = scmp.ne.s32.totalorder %s607_s3, %s366_s13  ;;  %p370_p9 = scmp.lt.u32.totalorder %s366_s13, %s607_s3 }
  0x19   :  { %p372_p10 = pnand %p370_p9, %p367_p8 }
  0x1b   :  { %375 = shalt.err (!%p372_p10)
}
  0x1c   :  { %s376_s1 = scalar_lea.vmem %s55_s8, 16  ;;  %s380_s18 = scalar_lea.vmem %s55_s8, 32 }
  0x1d   :  { %p377_p11 = scmp.ne.s32.totalorder %s55_s8, %s376_s1  ;;  %p381_p12 = scmp.lt.s32.totalorder %s55_s8, %s55_s8 }
  0x1e   :  { %p382_p13 = scmp.lt.s32.totalorder %s380_s18, %s376_s1 }
  0x20   :  { %p383_p0 = por %p382_p13, %p381_p12 }
  0x22   :  { %p384_p1 = pnand %p383_p0, %p377_p11 }
  0x24   :  { %387 = shalt.err (!%p384_p1)
}
  0x25   :  { %57 = dma.hbm_to_vmem [thread:$0]  %s607_s3, 16, %s55_s8, [#allocation9]  }
  0x26   :  { %s388_s23 = scalar_lea.hbm %s604_s0, 256 }
  0x27   :  { %p389_p2 = scmp.ne.s32.totalorder %s604_s0, %s388_s23  ;;  %p392_p3 = scmp.lt.u32.totalorder %s388_s23, %s604_s0 }
  0x29   :  { %p394_p4 = pnand %p392_p3, %p389_p2 }
  0x2b   :  { %397 = shalt.err (!%p394_p4)
}
  0x2c   :  { %s398_s28 = scalar_lea.vmem %s20_s10, 256  ;;  %p403_p6 = scmp.lt.s32.totalorder %s20_s10, %s20_s10 }
  0x2d   :  { %p399_p5 = scmp.ne.s32.totalorder %s20_s10, %s398_s28  ;;  %p404_p7 = scmp.lt.s32.totalorder %s398_s28, %s398_s28 }
  0x2f   :  { %p405_p8 = por %p404_p7, %p403_p6 }
  0x31   :  { %p406_p9 = pnand %p405_p8, %p399_p5 }
  0x33   :  { %409 = shalt.err (!%p406_p9)
}
  0x34   :  { %s489_s3 = smov 128   ;;  %s490_s29 = smov 8  }
  0x35   :  { %25 = dma.hbm_to_vmem [thread:$0]  %s604_s0, 256, %s20_s10, [#allocation3], %s489_s3, %s489_s3, %s490_s29  }
  0x36   :  { %s491_s7 = smov [#allocation7]   ;;  %s492_s9 = smov [#allocation10]  }
  0x37   :  { %s44_s8 = sshll.u32 %s491_s7, 4  ;;  %s64_s11 = sshll.u32 %s492_s9, 4  ;;  %s45_s8 = int_to_ptr.vmem [resolvable:$true] %s44_s8  ;;  %s65_s11 = int_to_ptr.vmem [resolvable:$true] %s64_s11 }
  0x38   :  { %s410_s14 = scalar_lea.hbm %s606_s2, 16 }
  0x39   :  { %p411_p10 = scmp.ne.s32.totalorder %s606_s2, %s410_s14  ;;  %p414_p11 = scmp.lt.u32.totalorder %s410_s14, %s606_s2 }
  0x3b   :  { %p416_p12 = pnand %p414_p11, %p411_p10 }
  0x3d   :  { %419 = shalt.err (!%p416_p12)
}
  0x3e   :  { %s420_s0 = scalar_lea.vmem %s45_s8, 16  ;;  %s424_s10 = scalar_lea.vmem %s45_s8, 32 }
  0x3f   :  { %p421_p13 = scmp.ne.s32.totalorder %s45_s8, %s420_s0  ;;  %p425_p0 = scmp.lt.s32.totalorder %s45_s8, %s45_s8 }
  0x40   :  { %p426_p1 = scmp.lt.s32.totalorder %s424_s10, %s420_s0 }
  0x42   :  { %p427_p2 = por %p426_p1, %p425_p0 }
  0x44   :  { %p428_p3 = pnand %p427_p2, %p421_p13 }
  0x46   :  { %431 = shalt.err (!%p428_p3)
}
  0x47   :  { %47 = dma.hbm_to_vmem [thread:$0]  %s606_s2, 16, %s45_s8, [#allocation6]  }
  0x48   :  { %s432_s22 = scalar_lea.hbm %s608_s4, 16 }
  0x49   :  { %p433_p4 = scmp.ne.s32.totalorder %s608_s4, %s432_s22  ;;  %p436_p5 = scmp.lt.u32.totalorder %s432_s22, %s608_s4 }
  0x4b   :  { %p438_p6 = pnand %p436_p5, %p433_p4 }
  0x4d   :  { %441 = shalt.err (!%p438_p6)
}
  0x4e   :  { %s442_s27 = scalar_lea.vmem %s65_s11, 16  ;;  %s446_s28 = scalar_lea.vmem %s65_s11, 32 }
  0x4f   :  { %p443_p7 = scmp.ne.s32.totalorder %s65_s11, %s442_s27  ;;  %p447_p8 = scmp.lt.s32.totalorder %s65_s11, %s65_s11 }
  0x50   :  { %p448_p9 = scmp.lt.s32.totalorder %s446_s28, %s442_s27 }
  0x52   :  { %p449_p10 = por %p448_p9, %p447_p8 }
  0x54   :  { %p450_p11 = pnand %p449_p10, %p443_p7 }
  0x56   :  { %453 = shalt.err (!%p450_p11)
}
  0x57   :  { %67 = dma.hbm_to_vmem [thread:$0]  %s608_s4, 16, %s65_s11, [#allocation9]  }
  0x58   :  { %476 = dma.done.wait [#allocation3], 256  }
  0x59   :  { %477 = vsyncadd [#allocation3], 4294967040 }
  0x5a   :  { %478 = dma.done.wait [#allocation6], 1040  }
  0x5b   :  { %479 = vsyncadd [#allocation6], 4294966256 }
  0x5c   :  { %480 = dma.done.wait [#allocation9], 32  }
  0x5d   :  { %481 = vsyncadd [#allocation9], 4294967264  ;;  %v493_v0 = vmov 0.0   ;;  %vm494_vm0 = vmmov 0   ;;  %v328_v1 = vld [vmem:[#allocation5] sm:$0xff]   ;;  %v329_v2 = vld [vmem:[#allocation5 + $0x8] sm:$0xff]  }
  0x5e   :  { %296 = vmatprep.subr.bf16.mxu0 %v493_v0  ;;  %312 = vmatprep.mubr.msk.bf16.mxu0 %vm494_vm0, %v493_v0  ;;  %v330_v3 = vld [vmem:[#allocation5 + $0x10] sm:$0xff]   ;;  %v331_v4 = vld [vmem:[#allocation5 + $0x18] sm:$0xff]   ;;  %v332_v5 = vld [vmem:[#allocation5 + $0x20] sm:$0xff]   ;;  %s495_s4 = smov [#allocation11]  }
  0x5f   :  { %297 = vmatpush3.bf16.msra.mxu0 %v328_v1  ;;  %v333_v6 = vld [vmem:[#allocation5 + $0x28] sm:$0xff]   ;;  %v334_v7 = vld [vmem:[#allocation5 + $0x30] sm:$0xff]   ;;  %v335_v8 = vld [vmem:[#allocation5 + $0x38] sm:$0xff]   ;;  %s262_s6 = sshll.u32 %s495_s4, 4  ;;  %s263_s6 = int_to_ptr.vmem [resolvable:$true] %s262_s6 }
  0x60   :  { %298 = vmatprep.subr.bf16.mxu0 %v493_v0  ;;  %v84_v9 = vld [vmem:[#allocation2] sm:$0xff]  ;;  %v85_v10 = vld [vmem:[#allocation2 + $0x8] sm:$0xff]  ;;  %v276_v12 = vld [vmem:[#allocation7] ss:$0 sm:$0xff]  ;;  %s454_s7 = scalar_lea.vmem %s263_s6, 256  ;;  %p459_p13 = scmp.lt.s32.totalorder %s263_s6, %s263_s6 }
  0x61   :  { %v86_v11 = vpack.c.bf16 %v85_v10, %v84_v9  ;;  %v285_v46 = vld [vmem:[#allocation8] ss:$0 sm:$0xff]  ;;  %v286_v48 = vld [vmem:[#allocation10] ss:$0 sm:$0xff]  ;;  %p455_p12 = scmp.ne.s32.totalorder %s263_s6, %s454_s7  ;;  %p460_p0 = scmp.lt.s32.totalorder %s454_s7, %s454_s7 }
  0x63   :  { %299 = vmatpush3.bf16.msra.mxu0 %v329_v2  ;;  %p461_p1 = por %p460_p0, %p459_p13 }
  0x64   :  { %300 = vmatprep.subr.bf16.mxu0 %v493_v0 }
  0x65   :  { %p462_p2 = pnand %p461_p1, %p455_p12 }
  0x67   :  { %301 = vmatpush3.bf16.msra.mxu0 %v330_v3 }
  0x68   :  { %302 = vmatprep.subr.bf16.mxu0 %v493_v0 }
  0x6b   :  { %303 = vmatpush3.bf16.msra.mxu0 %v331_v4 }
  0x6c   :  { %304 = vmatprep.subr.bf16.mxu0 %v493_v0 }
  0x6f   :  { %305 = vmatpush3.bf16.msra.mxu0 %v332_v5 }
  0x70   :  { %306 = vmatprep.subr.bf16.mxu0 %v493_v0 }
  0x73   :  { %307 = vmatpush3.bf16.msra.mxu0 %v333_v6 }
  0x74   :  { %308 = vmatprep.subr.bf16.mxu0 %v493_v0 }
  0x77   :  { %309 = vmatpush3.bf16.msra.mxu0 %v334_v7 }
  0x78   :  { %310 = vmatprep.subr.bf16.mxu0 %v493_v0 }
  0x7b   :  { %311 = vmatpush3.bf16.msra.mxu0 %v335_v8 }
  0x7e   :  { %313 = vmatmul.mubr.bf16.vlgmr.msra.gmra.mrb[0].mxu0 %v86_v11 }
 0x151   :  { %v192_v13 = vpop.f32.mrb[0].mxu0 }
 0x152   :  { %v193_v14 = vadd.f32 %v276_v12, %v192_v13  ;;  %v314_v15 = vpop.f32.mrb[1].mxu0 }
 0x153   :  { %v195_v16 = vpop.f32.mrb[2].mxu0 }
 0x154   :  { %v196_v17 = vadd.f32 %v276_v12, %v195_v16  ;;  %v315_v18 = vpop.f32.mrb[3].mxu0  ;;  %v201_v19 = vadd.f32 %v193_v14, %v84_v9 }
 0x156   :  { %203 = vadd.xlane.f32.xlu0 %v201_v19  ;;  %v202_v20 = vadd.f32 %v196_v17, %v85_v10 }
 0x15a   :  { %205 = vadd.xlane.f32.xlu0 %v202_v20 }
 0x1e3   :  { %v204_v21 = vpop.xlane.xlu0 %203 }
 0x1e4   :  { %v207_v22 = vmul.f32 0.0078125, %v204_v21 }
 0x1e6   :  { %v209_v23 = vsub.f32 %v201_v19, %v207_v22 }
 0x1e7   :  { %v206_v24 = vpop.xlane.xlu0 %205 }
 0x1e8   :  { %v208_v25 = vmul.f32 0.0078125, %v206_v24  ;;  %v211_v26 = vmul.f32 %v209_v23, %v209_v23 }
 0x1ea   :  { %v210_v27 = vsub.f32 %v202_v20, %v208_v25  ;;  %213 = vadd.xlane.f32.xlu1 %v211_v26 }
 0x1ec   :  { %v212_v28 = vmul.f32 %v210_v27, %v210_v27 }
 0x1ee   :  { %215 = vadd.xlane.f32.xlu1 %v212_v28 }
 0x277   :  { %v214_v29 = vpop.xlane.xlu1 %213 }
 0x278   :  { %v217_v30 = vmul.f32 0.007874016, %v214_v29 }
 0x27a   :  { %336 = vrsqrt.f32 %v217_v30  ;;  %vm221_vm1 = vcmp.eq.f32.partialorder %v217_v30, inf  ;;  %v224_v35 = vand.u32 2147483648, %v217_v30  ;;  %vm223_vm2 = vcmp.eq.f32.partialorder %v217_v30, 0.0 }
 0x27b   :  { %v216_v31 = vpop.xlane.xlu1 %215 }
 0x27c   :  { %v218_v32 = vmul.f32 0.007874016, %v216_v31 }
 0x27e   :  { %338 = vrsqrt.f32 %v218_v32  ;;  %vm228_vm3 = vcmp.eq.f32.partialorder %v218_v32, inf  ;;  %v231_v41 = vand.u32 2147483648, %v218_v32  ;;  %vm230_vm4 = vcmp.eq.f32.partialorder %v218_v32, 0.0 }
 0x284   :  { %v337_v33 = vpop.eup %336 }
 0x285   :  { %v220_v34 = vmul.f32 %v337_v33, %v217_v30 }
 0x287   :  { %v222_v36 = vsel %vm221_vm1, %v217_v30, %v220_v34 }
 0x288   :  { %v339_v37 = vpop.eup %338  ;;  %v225_v38 = vsel %vm223_vm2, %v224_v35, %v222_v36 }
 0x289   :  { %v227_v39 = vmul.f32 %v339_v37, %v218_v32  ;;  %v233_v40 = vadd.f32 1e-06, %v225_v38 }
 0x28b   :  { %v229_v42 = vsel %vm228_vm3, %v218_v32, %v227_v39  ;;  %340 = vrcp.f32 %v233_v40 }
 0x28c   :  { %v232_v43 = vsel %vm230_vm4, %v231_v41, %v229_v42 }
 0x28d   :  { %v234_v44 = vadd.f32 1e-06, %v232_v43 }
 0x28f   :  { %342 = vrcp.f32 %v234_v44 }
 0x295   :  { %v341_v45 = vpop.eup %340 }
 0x296   :  { %v237_v47 = vmul.f32 %v341_v45, %v209_v23 }
 0x298   :  { %v245_v49 = vmul.f32 %v285_v46, %v237_v47 }
 0x299   :  { %v343_v50 = vpop.eup %342 }
 0x29a   :  { %v238_v51 = vmul.f32 %v343_v50, %v210_v27  ;;  %v253_v52 = vadd.f32 %v286_v48, %v245_v49 }
 0x29c   :  { %v246_v53 = vmul.f32 %v285_v46, %v238_v51  ;;  %255 = vst [vmem:[#allocation11] sm:$0xff] %v253_v52 }
 0x29e   :  { %v254_v54 = vadd.f32 %v286_v48, %v246_v53 }
 0x2a0   :  { %256 = vst [vmem:[#allocation11 + $0x8] sm:$0xff] %v254_v54 }
 0x2a1   :  { %465 = shalt.err (!%p462_p2)
}
 0x2a2   :  { %s466_s11 = scalar_lea.hbm %s609_s5, 256 }
 0x2a3   :  { %p467_p3 = scmp.ne.s32.totalorder %s609_s5, %s466_s11  ;;  %p470_p4 = scmp.lt.u32.totalorder %s466_s11, %s609_s5 }
 0x2a5   :  { %p472_p5 = pnand %p470_p4, %p467_p3 }
 0x2a7   :  { %475 = shalt.err (!%p472_p5)
}
 0x2a8   :  { %268 = dma.vmem_to_hbm [thread:$0]  %s263_s6, 256, %s609_s5, [#allocation4], %s489_s3, %s489_s3, %s490_s29  }
 0x2a9   :  { %482 = dma.done.wait [#allocation4], 256  }
 0x2aa   :  { %483 = vsyncadd [#allocation4], 4294967040 }
 0x2ab   :  { %272 = vsyncpa [#allocation3], 1 }
 0x2ac   :  { %273 = vsyncpa [#allocation6], 1 }
 0x2ad   :  { %274 = vsyncpa [#allocation9], 1 }
 0x2ae   :  { %275 = vsyncpa [#allocation4], 1 }

</bundles_post_ra>
